<compile_context>
chip_gen: v7x
topology: tpu7x:2x2x1
jax: 0.10.0
libtpu: 0.0.40
codegen_flags: <defaults>
</compile_context>

<pallas_src>
import functools

import jax
import jax.numpy as jnp
from jax import lax
from jax.experimental import pallas as pl
from jax.experimental.pallas import tpu as pltpu


def _attention_kernel(x_ref, wqkv_ref, wout_ref, bout_ref, o_ref,
                      *, tb, n, heads, head_dim, scale):
    inner = heads * head_dim
    tokens = tb * n
    mm_dtype = wqkv_ref.dtype                        # MXU input dtype (f32 or bf16)

    x = x_ref[...]                                   # (tokens, C): all tokens in the block

    # Fused qkv projection: ONE MXU matmul over every token in the block.
    qkv = jnp.dot(x, wqkv_ref[...],
                  preferred_element_type=jnp.float32)        # (tokens, 3*inner), f32

    # Per-head attention with the output projection folded in.
    # heads is a small static count -> unrolled Python loop; y_acc lives in vregs.
    y_acc = None
    for h in range(heads):
        lo = h * head_dim
        # Lane slices at head_dim-aligned offsets; the reshapes only split the
        # leading (sublane-major) token dim, so they are layout no-ops.
        q = qkv[:, 0 * inner + lo:0 * inner + lo + head_dim] \
            .astype(mm_dtype).reshape(tb, n, head_dim)       # (TB, N, d)
        k = qkv[:, 1 * inner + lo:1 * inner + lo + head_dim] \
            .astype(mm_dtype).reshape(tb, n, head_dim)       # (TB, N, d)
        v = qkv[:, 2 * inner + lo:2 * inner + lo + head_dim] \
            .astype(mm_dtype).reshape(tb, n, head_dim)       # (TB, N, d)

        # scores: contract head_dim (last dim of BOTH operands) -> no k.T / XLU transpose.
        dots = lax.dot_general(
            q, k, dimension_numbers=(((2,), (2,)), ((0,), (0,))),
            preferred_element_type=jnp.float32) * scale      # (TB, N, N) f32

        # softmax in f32 (v5e has no bf16 VPU/EUP); denominator via EUP approx recip.
        dots = dots - jnp.max(dots, axis=-1, keepdims=True)
        p = jnp.exp(dots)
        attn = p * pl.reciprocal(jnp.sum(p, axis=-1, keepdims=True), approx=True)

        # out_h = attn @ v, batched over TB.
        out_h = lax.dot_general(
            attn.astype(mm_dtype), v,
            dimension_numbers=(((2,), (1,)), ((0,), (0,))),
            preferred_element_type=jnp.float32)              # (TB, N, d)

        # Fold this head's slice of the output projection:
        #   y_h = out_h @ w_out[lo:lo+d, :]   (accumulate in f32, no scratch slab)
        y_h = jnp.dot(out_h.reshape(tokens, head_dim).astype(mm_dtype),
                      wout_ref[lo:lo + head_dim, :],
                      preferred_element_type=jnp.float32)    # (tokens, C)
        y_acc = y_h if y_acc is None else y_acc + y_h

    # Single (bias-added) store of the block output.
    o_ref[...] = (y_acc + bout_ref[...]).astype(o_ref.dtype)


def _vmem_limits():
    """(block-picker budget, vmem_limit_bytes) per TPU generation."""
    phys = 128 * 1024 * 1024
    try:
        phys = int(pltpu.get_tpu_info().vmem_capacity_bytes)
    except Exception:
        pass
    if phys <= 64 * 1024 * 1024:                     # v7x-class: 64 MiB physical VMEM
        return 20 * 1024 * 1024, 32 * 1024 * 1024
    return 40 * 1024 * 1024, 64 * 1024 * 1024        # v5e / v6e: 128 MiB physical VMEM


def _pick_block_patches(bp, n, c, inner, act_itemsize, budget_bytes):
    """Largest divisor TB of B*P whose per-step working set fits the VMEM budget.

    Prefers a TB that leaves >=4 (else >=2) grid steps so BlockSpec
    double-buffering overlaps DMA with compute and the parallel axis can be
    sharded across both v7x TensorCores.
    """
    f32 = 4

    def est(tb):
        tokens = tb * n
        b = 2 * 2 * tokens * c * act_itemsize              # double-buffered x + out blocks
        b += 2 * (c * 3 * inner + inner * c + c) * act_itemsize  # resident weights + bias (x2 buffers)
        b += tokens * 3 * inner * f32                      # qkv activations (f32)
        b += 3 * tb * n * n * f32                          # scores / softmax temporaries (f32)
        b += 2 * tokens * c * f32                          # projection accumulator / temporaries
        return b

    divisors = [d for d in range(bp, 0, -1) if bp % d == 0]

    def ok(tb, need_steps):
        tokens_ok = (tb == bp) or ((tb * n) % 8 == 0)      # (8,128) sublane tiling rule
        return tokens_ok and est(tb) <= budget_bytes and (bp // tb) >= need_steps

    for need_steps in (4, 2, 1):
        for tb in divisors:
            if ok(tb, need_steps):
                return tb
    return 1


def attention_forward(x, w_qkv, w_out, b_out, *, heads, head_dim):
    """x: (B, P, N, C). Returns (B, P, N, C)."""
    B, P, N, C = x.shape
    inner = heads * head_dim
    assert w_qkv.shape == (C, 3 * inner)
    assert w_out.shape == (inner, C)
    scale = float(head_dim) ** (-0.5)

    budget_bytes, vmem_limit = _vmem_limits()

    BP = B * P
    dt = x.dtype
    tb = _pick_block_patches(BP, N, C, inner, jnp.dtype(dt).itemsize, budget_bytes)
    grid = (BP // tb,)
    tokens = tb * N

    x_flat = x.reshape(BP * N, C)
    w_qkv = w_qkv.astype(dt)                 # bf16 activations -> bf16 MXU matmuls (f32 acc)
    w_out = w_out.astype(dt)
    b_out2 = b_out.astype(jnp.float32).reshape(1, C)

    kernel = functools.partial(_attention_kernel, tb=tb, n=N,
                               heads=heads, head_dim=head_dim, scale=scale)

    out_flat = pl.pallas_call(
        kernel,
        out_shape=jax.ShapeDtypeStruct((BP * N, C), x.dtype),
        grid_spec=pltpu.PrefetchScalarGridSpec(
            num_scalar_prefetch=0,
            grid=grid,
            in_specs=[
                pl.BlockSpec((tokens, C), lambda i: (i, 0)),        # x block
                pl.BlockSpec((C, 3 * inner), lambda i: (0, 0)),     # w_qkv (resident)
                pl.BlockSpec((inner, C), lambda i: (0, 0)),         # w_out (resident)
                pl.BlockSpec((1, C), lambda i: (0, 0)),             # bias (resident)
            ],
            out_specs=pl.BlockSpec((tokens, C), lambda i: (i, 0)),
        ),
        compiler_params=pltpu.CompilerParams(
            dimension_semantics=("parallel",),
            vmem_limit_bytes=vmem_limit),
    )(x_flat, w_qkv, w_out, b_out2)

    return out_flat.reshape(B, P, N, C)


def attention_reference(x, w_qkv, w_out, b_out, *, heads, head_dim):
    """Pure-JAX reference mirroring the PyTorch forward."""
    B, P, N, C = x.shape
    inner = heads * head_dim
    scale = float(head_dim) ** (-0.5)
    qkv = x @ w_qkv                                             # (B,P,N,3*inner)
    q, k, v = jnp.split(qkv, 3, axis=-1)

    def split_heads(t):  # 'b p n (h d) -> b p h n d'
        return t.reshape(B, P, N, heads, head_dim).transpose(0, 1, 3, 2, 4)

    q, k, v = map(split_heads, (q, k, v))
    dots = jnp.einsum('bphnd,bphmd->bphnm', q, k) * scale
    attn = jax.nn.softmax(dots, axis=-1)
    out = jnp.einsum('bphnm,bphmd->bphnd', attn, v)
    out = out.transpose(0, 1, 3, 2, 4).reshape(B, P, N, inner)  # 'b p h n d -> b p n (h d)'
    return out @ w_out + b_out


if __name__ == "__main__":
    # Small shapes consistent with the module's forward: x is (b, p, n, dim)
    B, P, N, DIM = 2, 4, 8, 32
    HEADS, HEAD_DIM = 4, 8
    INNER = HEADS * HEAD_DIM

    key = jax.random.PRNGKey(0)
    kx, kq, kw, kb = jax.random.split(key, 4)

    x = jax.random.normal(kx, (B, P, N, DIM), dtype=jnp.float32)
    # nn.Linear(dim, inner*3, bias=False) / nn.Linear(inner, dim), stored (in, out).
    w_qkv = jax.random.normal(kq, (DIM, 3 * INNER), dtype=jnp.float32) * 0.05
    w_out = jax.random.normal(kw, (INNER, DIM), dtype=jnp.float32) * 0.05
    b_out = jax.random.normal(kb, (DIM,), dtype=jnp.float32) * 0.05

    y = attention_forward(x, w_qkv, w_out, b_out, heads=HEADS, head_dim=HEAD_DIM)
    y = jax.block_until_ready(y)

    y_ref = attention_reference(x, w_qkv, w_out, b_out, heads=HEADS, head_dim=HEAD_DIM)
    assert y.shape == (B, P, N, DIM)
    # Tolerance accounts for the EUP approximate-reciprocal softmax denominator.
    assert jnp.allclose(y, y_ref, atol=5e-3, rtol=5e-3), "mismatch vs reference"

    print("KERNEL_OK")
</pallas_src>

<mosaic_0001>
module attributes {stable_mosaic.version = 11 : i64} {
  func.func @_attention_kernel(%arg0: i32, %arg1: memref<16x32xf32, #tpu.memory_space<vmem>>, %arg2: memref<32x96xf32, #tpu.memory_space<vmem>>, %arg3: memref<32x32xf32, #tpu.memory_space<vmem>>, %arg4: memref<1x32xf32, #tpu.memory_space<vmem>>, %arg5: memref<16x32xf32, #tpu.memory_space<vmem>>) attributes {dimension_semantics = [#tpu.dimension_semantics<parallel>], iteration_bounds = array<i64: 4>, scalar_prefetch = 0 : i64, scratch_operands = 0 : i64, tpu.core_type = #tpu.core_type<tc>, window_params = [{transform_indices = @transform_0, window_bounds = array<i64: 16, 32>}, {pipeline_mode = #tpu.pipeline_mode<synchronous>, transform_indices = @transform_1, window_bounds = array<i64: 32, 96>}, {pipeline_mode = #tpu.pipeline_mode<synchronous>, transform_indices = @transform_2, window_bounds = array<i64: 32, 32>}, {pipeline_mode = #tpu.pipeline_mode<synchronous>, transform_indices = @transform_3, window_bounds = array<i64: 1, 32>}, {transform_indices = @transform_4, window_bounds = array<i64: 16, 32>}]} {
    %c0 = arith.constant 0 : index
    %c0_0 = arith.constant 0 : index
    %0 = vector.load %arg1[%c0, %c0_0] : memref<16x32xf32, #tpu.memory_space<vmem>>, vector<16x32xf32>
    %c0_1 = arith.constant 0 : index
    %c0_2 = arith.constant 0 : index
    %1 = vector.load %arg2[%c0_1, %c0_2] : memref<32x96xf32, #tpu.memory_space<vmem>>, vector<32x96xf32>
    %cst = arith.constant dense<0.000000e+00> : vector<16x96xf32>
    %2 = tpu.matmul %0, %1, %cst {dimension_numbers = #tpu.dot_dimension_numbers<[1], [0], [0], [1], [0, 0, 1, 1], [], []>} : vector<16x32xf32>, vector<32x96xf32>, vector<16x96xf32> -> vector<16x96xf32>
    %3 = vector.extract_strided_slice %2 {offsets = [0, 0], sizes = [16, 8], strides = [1, 1]} : vector<16x96xf32> to vector<16x8xf32>
    %4 = vector.shape_cast %3 : vector<16x8xf32> to vector<2x8x8xf32>
    %5 = vector.extract_strided_slice %2 {offsets = [0, 32], sizes = [16, 8], strides = [1, 1]} : vector<16x96xf32> to vector<16x8xf32>
    %6 = vector.shape_cast %5 : vector<16x8xf32> to vector<2x8x8xf32>
    %7 = vector.extract_strided_slice %2 {offsets = [0, 64], sizes = [16, 8], strides = [1, 1]} : vector<16x96xf32> to vector<16x8xf32>
    %8 = vector.shape_cast %7 : vector<16x8xf32> to vector<2x8x8xf32>
    %cst_3 = arith.constant dense<0.000000e+00> : vector<2x8x8xf32>
    %9 = tpu.matmul %4, %6, %cst_3 {dimension_numbers = #tpu.dot_dimension_numbers<[2], [2], [1], [1], [0, 0, 0, 1, 1, 1], [0], [0]>} : vector<2x8x8xf32>, vector<2x8x8xf32>, vector<2x8x8xf32> -> vector<2x8x8xf32>
    %cst_4 = arith.constant 0.353553385 : f32
    %10 = vector.broadcast %cst_4 : f32 to vector<2x8x8xf32>
    %11 = arith.mulf %9, %10 : vector<2x8x8xf32>
    %cst_5 = arith.constant dense<0xFF800000> : vector<2x8xf32>
    %12 = vector.multi_reduction <maximumf>, %11, %cst_5 [2] : vector<2x8x8xf32> to vector<2x8xf32>
    %13 = vector.shape_cast %12 : vector<2x8xf32> to vector<2x8x1xf32>
    %14 = vector.broadcast %13 : vector<2x8x1xf32> to vector<2x8x8xf32>
    %15 = arith.subf %11, %14 : vector<2x8x8xf32>
    %16 = math.exp %15 : vector<2x8x8xf32>
    %cst_6 = arith.constant dense<0.000000e+00> : vector<2x8xf32>
    %17 = vector.multi_reduction <add>, %16, %cst_6 [2] : vector<2x8x8xf32> to vector<2x8xf32>
    %18 = vector.shape_cast %17 : vector<2x8xf32> to vector<2x8x1xf32>
    %19 = tpu.reciprocal %18 {approx = true} : vector<2x8x1xf32> -> vector<2x8x1xf32>
    %20 = vector.broadcast %19 : vector<2x8x1xf32> to vector<2x8x8xf32>
    %21 = arith.mulf %16, %20 : vector<2x8x8xf32>
    %cst_7 = arith.constant dense<0.000000e+00> : vector<2x8x8xf32>
    %22 = tpu.matmul %21, %8, %cst_7 {dimension_numbers = #tpu.dot_dimension_numbers<[2], [1], [1], [2], [0, 0, 0, 1, 1, 2], [0], [0]>} : vector<2x8x8xf32>, vector<2x8x8xf32>, vector<2x8x8xf32> -> vector<2x8x8xf32>
    %23 = vector.shape_cast %22 : vector<2x8x8xf32> to vector<16x8xf32>
    %c0_8 = arith.constant 0 : index
    %c0_9 = arith.constant 0 : index
    %24 = vector.load %arg3[%c0_8, %c0_9] : memref<32x32xf32, #tpu.memory_space<vmem>>, vector<8x32xf32>
    %cst_10 = arith.constant dense<0.000000e+00> : vector<16x32xf32>
    %25 = tpu.matmul %23, %24, %cst_10 {dimension_numbers = #tpu.dot_dimension_numbers<[1], [0], [0], [1], [0, 0, 1, 1], [], []>} : vector<16x8xf32>, vector<8x32xf32>, vector<16x32xf32> -> vector<16x32xf32>
    %26 = vector.extract_strided_slice %2 {offsets = [0, 8], sizes = [16, 8], strides = [1, 1]} : vector<16x96xf32> to vector<16x8xf32>
    %27 = vector.shape_cast %26 : vector<16x8xf32> to vector<2x8x8xf32>
    %28 = vector.extract_strided_slice %2 {offsets = [0, 40], sizes = [16, 8], strides = [1, 1]} : vector<16x96xf32> to vector<16x8xf32>
    %29 = vector.shape_cast %28 : vector<16x8xf32> to vector<2x8x8xf32>
    %30 = vector.extract_strided_slice %2 {offsets = [0, 72], sizes = [16, 8], strides = [1, 1]} : vector<16x96xf32> to vector<16x8xf32>
    %31 = vector.shape_cast %30 : vector<16x8xf32> to vector<2x8x8xf32>
    %cst_11 = arith.constant dense<0.000000e+00> : vector<2x8x8xf32>
    %32 = tpu.matmul %27, %29, %cst_11 {dimension_numbers = #tpu.dot_dimension_numbers<[2], [2], [1], [1], [0, 0, 0, 1, 1, 1], [0], [0]>} : vector<2x8x8xf32>, vector<2x8x8xf32>, vector<2x8x8xf32> -> vector<2x8x8xf32>
    %cst_12 = arith.constant 0.353553385 : f32
    %33 = vector.broadcast %cst_12 : f32 to vector<2x8x8xf32>
    %34 = arith.mulf %32, %33 : vector<2x8x8xf32>
    %cst_13 = arith.constant dense<0xFF800000> : vector<2x8xf32>
    %35 = vector.multi_reduction <maximumf>, %34, %cst_13 [2] : vector<2x8x8xf32> to vector<2x8xf32>
    %36 = vector.shape_cast %35 : vector<2x8xf32> to vector<2x8x1xf32>
    %37 = vector.broadcast %36 : vector<2x8x1xf32> to vector<2x8x8xf32>
    %38 = arith.subf %34, %37 : vector<2x8x8xf32>
    %39 = math.exp %38 : vector<2x8x8xf32>
    %cst_14 = arith.constant dense<0.000000e+00> : vector<2x8xf32>
    %40 = vector.multi_reduction <add>, %39, %cst_14 [2] : vector<2x8x8xf32> to vector<2x8xf32>
    %41 = vector.shape_cast %40 : vector<2x8xf32> to vector<2x8x1xf32>
    %42 = tpu.reciprocal %41 {approx = true} : vector<2x8x1xf32> -> vector<2x8x1xf32>
    %43 = vector.broadcast %42 : vector<2x8x1xf32> to vector<2x8x8xf32>
    %44 = arith.mulf %39, %43 : vector<2x8x8xf32>
    %cst_15 = arith.constant dense<0.000000e+00> : vector<2x8x8xf32>
    %45 = tpu.matmul %44, %31, %cst_15 {dimension_numbers = #tpu.dot_dimension_numbers<[2], [1], [1], [2], [0, 0, 0, 1, 1, 2], [0], [0]>} : vector<2x8x8xf32>, vector<2x8x8xf32>, vector<2x8x8xf32> -> vector<2x8x8xf32>
    %46 = vector.shape_cast %45 : vector<2x8x8xf32> to vector<16x8xf32>
    %c8 = arith.constant 8 : index
    %c0_16 = arith.constant 0 : index
    %47 = vector.load %arg3[%c8, %c0_16] : memref<32x32xf32, #tpu.memory_space<vmem>>, vector<8x32xf32>
    %cst_17 = arith.constant dense<0.000000e+00> : vector<16x32xf32>
    %48 = tpu.matmul %46, %47, %cst_17 {dimension_numbers = #tpu.dot_dimension_numbers<[1], [0], [0], [1], [0, 0, 1, 1], [], []>} : vector<16x8xf32>, vector<8x32xf32>, vector<16x32xf32> -> vector<16x32xf32>
    %49 = arith.addf %25, %48 : vector<16x32xf32>
    %50 = vector.extract_strided_slice %2 {offsets = [0, 16], sizes = [16, 8], strides = [1, 1]} : vector<16x96xf32> to vector<16x8xf32>
    %51 = vector.shape_cast %50 : vector<16x8xf32> to vector<2x8x8xf32>
    %52 = vector.extract_strided_slice %2 {offsets = [0, 48], sizes = [16, 8], strides = [1, 1]} : vector<16x96xf32> to vector<16x8xf32>
    %53 = vector.shape_cast %52 : vector<16x8xf32> to vector<2x8x8xf32>
    %54 = vector.extract_strided_slice %2 {offsets = [0, 80], sizes = [16, 8], strides = [1, 1]} : vector<16x96xf32> to vector<16x8xf32>
    %55 = vector.shape_cast %54 : vector<16x8xf32> to vector<2x8x8xf32>
    %cst_18 = arith.constant dense<0.000000e+00> : vector<2x8x8xf32>
    %56 = tpu.matmul %51, %53, %cst_18 {dimension_numbers = #tpu.dot_dimension_numbers<[2], [2], [1], [1], [0, 0, 0, 1, 1, 1], [0], [0]>} : vector<2x8x8xf32>, vector<2x8x8xf32>, vector<2x8x8xf32> -> vector<2x8x8xf32>
    %cst_19 = arith.constant 0.353553385 : f32
    %57 = vector.broadcast %cst_19 : f32 to vector<2x8x8xf32>
    %58 = arith.mulf %56, %57 : vector<2x8x8xf32>
    %cst_20 = arith.constant dense<0xFF800000> : vector<2x8xf32>
    %59 = vector.multi_reduction <maximumf>, %58, %cst_20 [2] : vector<2x8x8xf32> to vector<2x8xf32>
    %60 = vector.shape_cast %59 : vector<2x8xf32> to vector<2x8x1xf32>
    %61 = vector.broadcast %60 : vector<2x8x1xf32> to vector<2x8x8xf32>
    %62 = arith.subf %58, %61 : vector<2x8x8xf32>
    %63 = math.exp %62 : vector<2x8x8xf32>
    %cst_21 = arith.constant dense<0.000000e+00> : vector<2x8xf32>
    %64 = vector.multi_reduction <add>, %63, %cst_21 [2] : vector<2x8x8xf32> to vector<2x8xf32>
    %65 = vector.shape_cast %64 : vector<2x8xf32> to vector<2x8x1xf32>
    %66 = tpu.reciprocal %65 {approx = true} : vector<2x8x1xf32> -> vector<2x8x1xf32>
    %67 = vector.broadcast %66 : vector<2x8x1xf32> to vector<2x8x8xf32>
    %68 = arith.mulf %63, %67 : vector<2x8x8xf32>
    %cst_22 = arith.constant dense<0.000000e+00> : vector<2x8x8xf32>
    %69 = tpu.matmul %68, %55, %cst_22 {dimension_numbers = #tpu.dot_dimension_numbers<[2], [1], [1], [2], [0, 0, 0, 1, 1, 2], [0], [0]>} : vector<2x8x8xf32>, vector<2x8x8xf32>, vector<2x8x8xf32> -> vector<2x8x8xf32>
    %70 = vector.shape_cast %69 : vector<2x8x8xf32> to vector<16x8xf32>
    %c16 = arith.constant 16 : index
    %c0_23 = arith.constant 0 : index
    %71 = vector.load %arg3[%c16, %c0_23] : memref<32x32xf32, #tpu.memory_space<vmem>>, vector<8x32xf32>
    %cst_24 = arith.constant dense<0.000000e+00> : vector<16x32xf32>
    %72 = tpu.matmul %70, %71, %cst_24 {dimension_numbers = #tpu.dot_dimension_numbers<[1], [0], [0], [1], [0, 0, 1, 1], [], []>} : vector<16x8xf32>, vector<8x32xf32>, vector<16x32xf32> -> vector<16x32xf32>
    %73 = arith.addf %49, %72 : vector<16x32xf32>
    %74 = vector.extract_strided_slice %2 {offsets = [0, 24], sizes = [16, 8], strides = [1, 1]} : vector<16x96xf32> to vector<16x8xf32>
    %75 = vector.shape_cast %74 : vector<16x8xf32> to vector<2x8x8xf32>
    %76 = vector.extract_strided_slice %2 {offsets = [0, 56], sizes = [16, 8], strides = [1, 1]} : vector<16x96xf32> to vector<16x8xf32>
    %77 = vector.shape_cast %76 : vector<16x8xf32> to vector<2x8x8xf32>
    %78 = vector.extract_strided_slice %2 {offsets = [0, 88], sizes = [16, 8], strides = [1, 1]} : vector<16x96xf32> to vector<16x8xf32>
    %79 = vector.shape_cast %78 : vector<16x8xf32> to vector<2x8x8xf32>
    %cst_25 = arith.constant dense<0.000000e+00> : vector<2x8x8xf32>
    %80 = tpu.matmul %75, %77, %cst_25 {dimension_numbers = #tpu.dot_dimension_numbers<[2], [2], [1], [1], [0, 0, 0, 1, 1, 1], [0], [0]>} : vector<2x8x8xf32>, vector<2x8x8xf32>, vector<2x8x8xf32> -> vector<2x8x8xf32>
    %cst_26 = arith.constant 0.353553385 : f32
    %81 = vector.broadcast %cst_26 : f32 to vector<2x8x8xf32>
    %82 = arith.mulf %80, %81 : vector<2x8x8xf32>
    %cst_27 = arith.constant dense<0xFF800000> : vector<2x8xf32>
    %83 = vector.multi_reduction <maximumf>, %82, %cst_27 [2] : vector<2x8x8xf32> to vector<2x8xf32>
    %84 = vector.shape_cast %83 : vector<2x8xf32> to vector<2x8x1xf32>
    %85 = vector.broadcast %84 : vector<2x8x1xf32> to vector<2x8x8xf32>
    %86 = arith.subf %82, %85 : vector<2x8x8xf32>
    %87 = math.exp %86 : vector<2x8x8xf32>
    %cst_28 = arith.constant dense<0.000000e+00> : vector<2x8xf32>
    %88 = vector.multi_reduction <add>, %87, %cst_28 [2] : vector<2x8x8xf32> to vector<2x8xf32>
    %89 = vector.shape_cast %88 : vector<2x8xf32> to vector<2x8x1xf32>
    %90 = tpu.reciprocal %89 {approx = true} : vector<2x8x1xf32> -> vector<2x8x1xf32>
    %91 = vector.broadcast %90 : vector<2x8x1xf32> to vector<2x8x8xf32>
    %92 = arith.mulf %87, %91 : vector<2x8x8xf32>
    %cst_29 = arith.constant dense<0.000000e+00> : vector<2x8x8xf32>
    %93 = tpu.matmul %92, %79, %cst_29 {dimension_numbers = #tpu.dot_dimension_numbers<[2], [1], [1], [2], [0, 0, 0, 1, 1, 2], [0], [0]>} : vector<2x8x8xf32>, vector<2x8x8xf32>, vector<2x8x8xf32> -> vector<2x8x8xf32>
    %94 = vector.shape_cast %93 : vector<2x8x8xf32> to vector<16x8xf32>
    %c24 = arith.constant 24 : index
    %c0_30 = arith.constant 0 : index
    %95 = vector.load %arg3[%c24, %c0_30] : memref<32x32xf32, #tpu.memory_space<vmem>>, vector<8x32xf32>
    %cst_31 = arith.constant dense<0.000000e+00> : vector<16x32xf32>
    %96 = tpu.matmul %94, %95, %cst_31 {dimension_numbers = #tpu.dot_dimension_numbers<[1], [0], [0], [1], [0, 0, 1, 1], [], []>} : vector<16x8xf32>, vector<8x32xf32>, vector<16x32xf32> -> vector<16x32xf32>
    %97 = arith.addf %73, %96 : vector<16x32xf32>
    %c0_32 = arith.constant 0 : index
    %c0_33 = arith.constant 0 : index
    %98 = vector.load %arg4[%c0_32, %c0_33] : memref<1x32xf32, #tpu.memory_space<vmem>>, vector<1x32xf32>
    %99 = vector.broadcast %98 : vector<1x32xf32> to vector<16x32xf32>
    %100 = arith.addf %97, %99 : vector<16x32xf32>
    %c0_34 = arith.constant 0 : index
    %c0_35 = arith.constant 0 : index
    %101 = vector.load %arg5[%c0_34, %c0_35] : memref<16x32xf32, #tpu.memory_space<vmem>>, vector<16x32xf32>
    tpu.vector_store %arg5[%c0_34, %c0_35], %100 {strides = array<i32>} : memref<16x32xf32, #tpu.memory_space<vmem>>, vector<16x32xf32>,
    return
  }
  func.func @transform_0(%arg0: i32) -> (i32, i32) {
    %c0_i32 = arith.constant 0 : i32
    %c0_i32_0 = arith.constant 0 : i32
    return %arg0, %c0_i32 : i32, i32
  }
  func.func @transform_1(%arg0: i32) -> (i32, i32) {
    %c0_i32 = arith.constant 0 : i32
    %c0_i32_0 = arith.constant 0 : i32
    %c0_i32_1 = arith.constant 0 : i32
    return %c0_i32, %c0_i32_0 : i32, i32
  }
  func.func @transform_2(%arg0: i32) -> (i32, i32) {
    %c0_i32 = arith.constant 0 : i32
    %c0_i32_0 = arith.constant 0 : i32
    %c0_i32_1 = arith.constant 0 : i32
    return %c0_i32, %c0_i32_0 : i32, i32
  }
  func.func @transform_3(%arg0: i32) -> (i32, i32) {
    %c0_i32 = arith.constant 0 : i32
    %c0_i32_0 = arith.constant 0 : i32
    %c0_i32_1 = arith.constant 0 : i32
    return %c0_i32, %c0_i32_0 : i32, i32
  }
  func.func @transform_4(%arg0: i32) -> (i32, i32) {
    %c0_i32 = arith.constant 0 : i32
    %c0_i32_0 = arith.constant 0 : i32
    return %arg0, %c0_i32 : i32, i32
  }
}

</mosaic_0001>

<bundles_post_ra>
// kernel: tpu_custom_call.1
= control target key start
LH: loop header
LB: loop body
LE: loop exit
PB: predicated region body
PF: predicated region fallthrough
CT: control target
= control target key end

     0   :  { %9 = vsyncpa [#allocation3], 0  ;;  %s3139_s0 = inlined_call_operand.hbm [shape: f32[64,32], index: 0, kind: input, shape index: {}]   ;;  %s3140_s1 = inlined_call_operand.hbm [shape: f32[32,96], index: 1, kind: input, shape index: {}]   ;;  %s3141_s2 = inlined_call_operand.hbm [shape: f32[32,32], index: 2, kind: input, shape index: {}]   ;;  %s3142_s3 = inlined_call_operand.hbm [shape: f32[1,32], index: 3, kind: input, shape index: {}]   ;;  %s3143_s4 = inlined_call_operand.hbm [shape: f32[64,32], index: 4, kind: output, shape index: {}]  }
   0x1   :  { %11 = vsyncpa [#allocation3 + $0x1], 0 }
   0x2   :  { %12 = vsyncpa [#allocation6], 0 }
   0x3   :  { %13 = vsyncpa [#allocation9], 0 }
   0x4   :  { %14 = vsyncpa [#allocation4], 0 }
   0x5   :  { %16 = vsyncpa [#allocation4 + $0x1], 0  ;;  %s2729_s15 = smov 0   ;;  %s2731_s16 = smov 0  }
   0x6   :  { %s2733_s17 = smov 0   ;;  %s2735_s18 = smov 0  }
   0x7 LB: > { %s2750_s19 = sadd.s32 4294967295, %s2680_s18   ;;  %s2134_s20 = sadd.s32 4294967294, %s2680_s18   ;;  %s2680_s18 = sphi %s2735_s18, %s3165_s18   ;;  %s2676_s17 = sphi %s2733_s17, %s3164_s17   ;;  %s2672_s16 = sphi %s2731_s16, %s3163_s16   ;;  %s2668_s15 = sphi %s2729_s15, %s3162_s15  }
   0x8   : > { %p42_p0 = scmp.ne.s32.totalorder %s2672_s16, %s2668_s15  ;;  %p3144_p1 = scmp.eq.s32.totalorder %s2750_s19, 0 }
   0x9   : > { %p135_p3 = scmp.eq.s32.totalorder %s2134_s20, 3  ;;  %p2135_p5 = scmp.ge.s32.totalorder %s2680_s18, 1 }
   0xa   : > { %p2759_p4 = por %p3144_p1, %p42_p0  ;;  %p142_p7 = scmp.lt.s32.totalorder %s2680_s18, 5 }
   0xb   : > { %p2764_p6 = por %p135_p3, %p42_p0  ;;  %s2682_s24 = smov [#allocation5]  }
   0xc   : > { %s3147_s21 = scalar_select %p2759_p4, 1, 0 }
   0xd   : > { %s3148_s22 = scalar_select %p2764_p6, 1, 0 }
   0xe   : > { %p2769_p8 = pnand %p2135_p5, %p142_p7  ;;  %s154_s25 = sshll.u32 %s2682_s24, 4  ;;  %s2773_s25 = int_to_ptr.vmem [resolvable:$true] %s154_s25 }
   0xf   : > { %s2683_s27 = smov [#allocation7]   ;;  %s2684_s29 = smov [#allocation8]  }
  0x10   : > { %s3149_s23 = scalar_select %p2769_p8, 1, 0 }
  0x11   : > { %p2382_p9 = pneg %p2769_p8  ;;  %s167_s28 = sshll.u32 %s2683_s27, 4  ;;  %s2783_s28 = int_to_ptr.vmem [resolvable:$true] %s167_s28 }
  0x12   : > { %s2785_s30 = sshll.u32 %s2684_s29, 4  ;;  %s2492_s7 = scalar_lea.hbm %s3140_s1, 512  ;;  %s182_s30 = int_to_ptr.vmem [resolvable:$true] %s2785_s30 }
  0x13   : > { %p2779_p10 = pnand %p2382_p9, %p3144_p1  ;;  %p2493_p11 = scmp.ne.s32.totalorder %s3140_s1, %s2492_s7 }
  0x14   : > { %p2499_p3 = scmp.lt.u32.totalorder %s2492_s7, %s3140_s1 }
  0x15   : > { %p2795_p12 = pneg %p2779_p10 }
  0x17   : > { %p2495_p13 = pnand %p2795_p12, %p2493_p11 }
  0x19   : > { %p2496_p0 = pneg %p2495_p13 }
  0x1b   : > { %p2501_p5 = pnand %p2499_p3, %p2496_p0 }
  0x1d   : > { %2504 = shalt.err (!%p2501_p5)
}
  0x1e   : > { %s2505_s13 = scalar_lea.vmem %s2773_s25, 512  ;;  %p2513_p2 = scmp.lt.s32.totalorder %s2773_s25, %s2773_s25 }
  0x1f   : > { %p2506_p7 = scmp.ne.s32.totalorder %s2773_s25, %s2505_s13  ;;  %p2514_p6 = scmp.lt.s32.totalorder %s2505_s13, %s2505_s13 }
  0x21   : > { %p2508_p9 = pnand %p2506_p7, %p2795_p12  ;;  %p2515_p11 = por %p2514_p6, %p2513_p2 }
  0x23   : > { %p2509_p1 = pneg %p2508_p9 }
  0x25   : > { %p2516_p13 = pnand %p2515_p11, %p2509_p1 }
  0x27   : > { %2519 = shalt.err (!%p2516_p13)
}
  0x28   : > { %s2685_s14 = smov 128   ;;  %s2686_s20 = smov 8  }
  0x29   : > { %2385 = dma.hbm_to_vmem [thread:$0]  (!%p2779_p10), %s3140_s1, 512, %s2773_s25, [#allocation6], %s2685_s14, %s2685_s14, %s2686_s20  }
  0x2a   : > { %s2520_s6 = scalar_lea.hbm %s3141_s2, 512 }
  0x2b   : > { %p2521_p1 = scmp.ne.s32.totalorder %s3141_s2, %s2520_s6  ;;  %p2527_p0 = scmp.lt.u32.totalorder %s2520_s6, %s3141_s2 }
  0x2d   : > { %p2523_p2 = pnand %p2521_p1, %p2795_p12 }
  0x2f   : > { %p2524_p6 = pneg %p2523_p2 }
  0x31   : > { %p2529_p3 = pnand %p2527_p0, %p2524_p6 }
  0x33   : > { %2532 = shalt.err (!%p2529_p3)
}
  0x34   : > { %s2533_s25 = scalar_lea.vmem %s2783_s28, 512  ;;  %p2541_p11 = scmp.lt.s32.totalorder %s2783_s28, %s2783_s28 }
  0x35   : > { %p2534_p5 = scmp.ne.s32.totalorder %s2783_s28, %s2533_s25  ;;  %p2542_p13 = scmp.lt.s32.totalorder %s2533_s25, %s2533_s25 }
  0x37   : > { %p2536_p7 = pnand %p2534_p5, %p2795_p12  ;;  %p2543_p1 = por %p2542_p13, %p2541_p11 }
  0x39   : > { %p2537_p9 = pneg %p2536_p7 }
  0x3b   : > { %p2544_p2 = pnand %p2543_p1, %p2537_p9 }
  0x3d   : > { %2547 = shalt.err (!%p2544_p2)
}
  0x3e   : > { %2388 = dma.hbm_to_vmem [thread:$0]  (!%p2779_p10), %s3141_s2, 512, %s2783_s28, [#allocation6], %s2685_s14, %s2685_s14, %s2686_s20  }
  0x3f   : > { %s2548_s29 = scalar_lea.hbm %s3142_s3, 16 }
  0x40   : > { %p2549_p6 = scmp.ne.s32.totalorder %s3142_s3, %s2548_s29  ;;  %p2555_p5 = scmp.lt.u32.totalorder %s2548_s29, %s3142_s3 }
  0x42   : > { %p2551_p0 = pnand %p2549_p6, %p2795_p12 }
  0x44   : > { %p2552_p3 = pneg %p2551_p0 }
  0x46   : > { %p2557_p7 = pnand %p2555_p5, %p2552_p3 }
  0x48   : > { %2560 = shalt.err (!%p2557_p7)
}
  0x49   : > { %s2561_s9 = scalar_lea.vmem %s182_s30, 16  ;;  %s2568_s28 = scalar_lea.vmem %s182_s30, 32 }
  0x4a   : > { %p2562_p9 = scmp.ne.s32.totalorder %s182_s30, %s2561_s9  ;;  %p2569_p1 = scmp.lt.s32.totalorder %s182_s30, %s182_s30 }
  0x4b   : > { %p2570_p2 = scmp.lt.s32.totalorder %s2568_s28, %s2561_s9 }
  0x4c   : > { %p2564_p11 = pnand %p2562_p9, %p2795_p12 }
  0x4d   : > { %p2571_p4 = por %p2570_p2, %p2569_p1 }
  0x4e   : > { %p2565_p13 = pneg %p2564_p11 }
  0x50   : > { %p2572_p8 = pnand %p2571_p4, %p2565_p13 }
  0x52   : > { %2575 = shalt.err (!%p2572_p8)
}
  0x53   : > { %2391 = dma.hbm_to_vmem [thread:$0]  (!%p2779_p10), %s3142_s3, 16, %s182_s30, [#allocation9]  }
  0x54   : > { %s2865_s10 = sadd.s32 1, %s2680_s18   ;;  %s29_s26 = sadd.s32 1, %s2676_s17 }
  0x55   : > { %s26_s12 = ssub.s32 %s2680_s18, %s2865_s10  ;;  %p36_p8 = scmp.ne.s32.totalorder %s2676_s17, %s2672_s16 }
  0x56   : > { %p27_p4 = scmp.eq.s32.totalorder %s26_s12, 0  ;;  %p37_p12 = scmp.eq.s32.totalorder %s2680_s18, 0 }
  0x57   : > { %p2403_p6 = scmp.lt.s32.totalorder %s2680_s18, 4  ;;  %p3152_p3 = scmp.eq.s32.totalorder %s2750_s19, 3 }
  0x58   : > { %s2875_s13 = scalar_select %p27_p4, %s2676_s17, %s29_s26  }
  0x59   : > { %p38_p0 = por %p37_p12, %p36_p8  ;;  %p2879_p5 = por %p3152_p3, %p36_p8 }
  0x5a   : > { %s192_s27 = sand.u32 1, %s2676_s17   ;;  %s2189_s29 = sshll.u32 %s2680_s18, 8 }
  0x5b   : > { %s2140_s30 = sshll.u32 %s192_s27, 4  ;;  %s2888_s7 = scalar_lea.hbm %s3139_s0, %s2189_s29 }
  0x5c   : > { %s196_s8 = scalar_lea.vmem [#allocation2], %s2140_s30  ;;  %p2890_p10 = pnand %p2403_p6, %p38_p0 }
  0x5d   : > { %s203_s9 = sshll.u32 %s196_s8, 4  ;;  %s2896_s11 = scalar_lea.sflag [#allocation3], %s192_s27  ;;  %s2894_s9 = int_to_ptr.vmem [resolvable:$true] %s203_s9 }
  0x5e   : > { %s2576_s25 = scalar_lea.hbm %s2888_s7, 256  ;;  %p2578_p9 = pneg %p2890_p10 }
  0x5f   : > { %p2577_p7 = scmp.ne.s32.totalorder %s2888_s7, %s2576_s25  ;;  %s2581_s29 = scalar_lea.hbm %s3139_s0, 1024 }
  0x60   : > { %p2582_p1 = scmp.lt.u32.totalorder %s2888_s7, %s3139_s0  ;;  %p2583_p2 = scmp.lt.u32.totalorder %s2581_s29, %s2576_s25 }
  0x61   : > { %p2579_p11 = pnand %p2578_p9, %p2577_p7  ;;  %p2585_p8 = scmp.lt.u32.totalorder %s2576_s25, %s2888_s7 }
  0x62   : > { %p2584_p4 = por %p2583_p2, %p2582_p1 }
  0x63   : > { %p2580_p13 = pneg %p2579_p11 }
  0x64   : > { %p2586_p12 = por %p2585_p8, %p2584_p4 }
  0x66   : > { %p2587_p6 = pnand %p2586_p12, %p2580_p13 }
  0x68   : > { %2590 = shalt.err (!%p2587_p6)
}
  0x69   : > { %s2591_s27 = scalar_lea.vmem %s2894_s9, 256  ;;  %s2687_s6 = smov [#allocation2]  }
  0x6a   : > { %p2592_p0 = scmp.ne.s32.totalorder %s2894_s9, %s2591_s27  ;;  %s2596_s8 = sshll.u32 %s2687_s6, 4  ;;  %s2597_s8 = int_to_ptr.vmem [resolvable:$false] %s2596_s8 }
  0x6b   : > { %s2598_s12 = scalar_lea.vmem %s2597_s8, 512  ;;  %p2599_p11 = scmp.lt.s32.totalorder %s2894_s9, %s2597_s8 }
  0x6c   : > { %p2594_p3 = pnand %p2592_p0, %p2578_p9  ;;  %p2600_p1 = scmp.lt.s32.totalorder %s2598_s12, %s2591_s27 }
  0x6e   : > { %p2595_p7 = pneg %p2594_p3  ;;  %p2601_p2 = por %p2600_p1, %p2599_p11 }
  0x70   : > { %p2602_p4 = pnand %p2601_p2, %p2595_p7 }
  0x72   : > { %2605 = shalt.err (!%p2602_p4)
}
  0x73   : > { %2395 = dma.hbm_to_vmem [thread:$0]  (!%p2890_p10), %s2888_s7, 256, %s2894_s9, %s2896_s11, %s2685_s14, %s2685_s14, %s2686_s20  }
  0x74   : > { %p3155_p9 = scmp.ne.s32.totalorder %s3149_s23, 0 }
  0x75   : > { %s2930_s25 = sand.u32 (!%p3155_p9), 1, %s2672_s16   ;;  %p3156_p13 = scmp.ne.s32.totalorder (!%p3155_p9), %s3147_s21, 0 }
  0x76   : > { %215 = sbr.rel (%p3155_p9) target bundleno = 3264 (0xcc0), region = 36  ;;  %s2144_s26 = sshll.u32 (!%p3155_p9), %s2930_s25, 4 }
  0x77   : > { %s218_s29 = scalar_lea.sflag (!%p3155_p9), [#allocation3], %s2930_s25  ;;  %s221_s28 = scalar_lea.vmem (!%p3155_p9), [#allocation2], %s2144_s26 }
  0x7d   : > { %2651 = dma.done.wait (%p3156_p13), %s218_s29, 256  }
  0x7e   : > { %2653 = vsyncadd (%p3156_p13), %s218_s29, 4294967040  ;;  %p3157_p10 = scmp.eq.s32.totalorder %s2750_s19, 0 }
  0x80   : > { %2655 = dma.done.wait (%p3157_p10), [#allocation6], 1024   ;;  %p3158_p8 = pmov %p3157_p10 }
  0x82   : > { %2657 = vsyncadd (%p3158_p8), [#allocation6], 4294966272  ;;  %p3159_p12 = pmov %p3158_p8 }
  0x83   : > { %p3160_p6 = pmov %p3158_p8 }
  0x84   : > { %2659 = dma.done.wait (%p3159_p12), [#allocation9], 16  }
  0x85   : > { %2661 = vsyncadd (%p3160_p6), [#allocation9], 4294967280  ;;  %vm266_vm0 = vcmask 261120   ;;  %v262_v0 = vld [vmem:[#allocation5] sm:$0xff]  ;;  %v263_v1 = vld [vmem:[#allocation5 + $0x8] sm:$0xff]  ;;  %v2688_v8 = vmov 0.0  }
  0x86   : > { %v264_v2 = vld [vmem:[#allocation5 + $0x10] sm:$0xff]  ;;  %v2352_v3 = vpack.c.bf16 %v263_v1, %v262_v0  ;;  %v265_v4 = vld [vmem:[#allocation5 + $0x18] sm:$0xff]  ;;  %2252 = vmatprep.subr.mxu1 %v2688_v8  ;;  %vm2689_vm1 = vmmov 0   ;;  %s2690_s21 = smov 96   ;;  %vm351_vm2 = vcmask 64512   ;;  %s2691_s23 = smov 64  }
  0x87   : > { %v260_v5 = vld [vmem:[%s221_s28] sm:$0xff]  ;;  %v2356_v6 = vpack.c.bf16 %v265_v4, %v264_v2  ;;  %v261_v7 = vld [vmem:[%s221_s28 + $0x8] sm:$0xff]  ;;  %2254 = vmatprep.mubr.msk.f32.mxu1 %vm2689_vm1, %v2688_v8  ;;  %s2692_s14 = smov 88   ;;  %s2693_s20 = smov 120  }
  0x88   : > { %2249 = vmatprep.mubr.msk.f32.mxu0 %vm266_vm0, %v260_v5  ;;  %2353 = vmatprep.subr.bf16.mxu0 %v2352_v3  ;;  %s2694_s7 = smov 56   ;;  %s2695_s9 = smov 112  }
  0x89   : > { %2355 = vmatpush3.bf16.msra.mxu0 %v2352_v3  ;;  %s2696_s11 = smov 80   ;;  %s2697_s30 = smov 48  }
  0x8a   : > { %2357 = vmatprep.subr.bf16.mxu0 %v2356_v6  ;;  %s2698_s5 = smov 72   ;;  %s2699_s27 = smov 104  }
  0x8b   : > { %s2700_s6 = smov 40   ;;  %s257_s8 = scalar_lea.vmem [#allocation10], %s2144_s26 }
  0x8c   : > { %s2032_s12 = sshll.u32 %s257_s8, 4  ;;  %s2190_s29 = sshll.u32 %s2750_s19, 8  ;;  %s3089_s12 = int_to_ptr.vmem [resolvable:$true] %s2032_s12 }
  0x8d   : > { %2359 = vmatpush3.bf16.msra.mxu0 %v2356_v6  ;;  %s2019_s26 = scalar_lea.sflag [#allocation4], %s2930_s25  ;;  %s2606_s19 = scalar_lea.vmem %s3089_s12, 256 }
  0x8e   : > { %2272 = vmatprep.subr.mxu0 %v2688_v8  ;;  %p2607_p0 = scmp.ne.s32.totalorder %s3089_s12, %s2606_s19 }
  0x90   : > { %2250 = vmatmul.mubr.msk.f32.vlgmr.msra.gmra.mrb[0].mxu0 %vm266_vm0, %v261_v7  ;;  %p2608_p3 = pnand %p2607_p0, %p2879_p5 }
  0x91   : > { %2274 = vmatprep.mubr.msk.f32.mxu0 %vm2689_vm1, %v2688_v8 }
  0x92   : > { %p2609_p7 = pneg %p2608_p3 }
 0x163   : > { %v2956_v9 = vpop.f32.mrb[0].mxu0 }
 0x164   : > { %v2958_v10 = vpop.f32.mrb[1].mxu0 }
 0x165   : > { %349 = vrot.lane.b32.xlu0 %v2958_v10, %s2690_s21 }
 0x169   : > { %427 = vrot.lane.b32.xlu0 %v2956_v9, %s2690_s21 }
 0x1d7   : > { %v350_v11 = vpop.permute.xlu0 %349 }
 0x1d8   : > { %2253 = vmatpush3.xpose.msk.msra.mxu1 %vm351_vm2, %v350_v11 }
 0x1d9   : > { %2257 = vmatprep.subr.mxu1 %v2688_v8 }
 0x1db   : > { %2255 = vmatmul.mubr.msk.f32.vlgmr.msra.gmra.mrb[0].mxu1 %vm351_vm2, %v2958_v10  ;;  %v428_v12 = vpop.permute.xlu0 %427 }
 0x1dc   : > { %2258 = vmatpush3.xpose.msk.msra.mxu1 %vm351_vm2, %v428_v12  ;;  %2259 = vmatprep.mubr.msk.f32.mxu1 %vm2689_vm1, %v2688_v8 }
 0x1dd   : > { %2262 = vmatprep.subr.mxu1 %v2688_v8 }
 0x1df   : > { %2260 = vmatmul.mubr.msk.f32.vlgmr.msra.gmra.mrb[2].mxu1 %vm351_vm2, %v2956_v9 }
 0x1e0   : > { %2264 = vmatprep.mubr.msk.f32.mxu1 %vm2689_vm1, %v2688_v8 }
 0x2ae   : > { %v422_v13 = vpop.f32.mrb[0].mxu1 }
 0x2af   : > { %v503_v14 = vmul.f32 0.35355338, %v422_v13  ;;  %v2256_v15 = vpop.f32.mrb[1].mxu1 }
 0x2b1   : > { %v505_v16 = vsel %vm351_vm2, %v503_v14, -inf }
 0x2b2   : > { %506 = vmax.xlane.f32.xlu1 %v505_v16  ;;  %v499_v17 = vpop.f32.mrb[2].mxu1 }
 0x2b3   : > { %v504_v18 = vmul.f32 0.35355338, %v499_v17  ;;  %v2261_v19 = vpop.f32.mrb[3].mxu1  ;;  %v1012_v17 = vld [vmem:[#allocation7 + $0x8] sm:$0xff] }
 0x2b5   : > { %v508_v20 = vsel %vm351_vm2, %v504_v18, -inf }
 0x2b6   : > { %509 = vmax.xlane.f32.xlu1 %v508_v20 }
 0x2c7   : > { %527 = vrot.lane.b32.xlu1 %v2958_v10, %s2691_s23 }
 0x2cb   : > { %603 = vrot.lane.b32.xlu1 %v2956_v9, %s2691_s23  ;;  %s3094_s23 = scalar_lea.hbm %s3143_s4, %s2190_s29 }
 0x2cf   : > { %760 = vrot.lane.b32.xlu1 %v2956_v9, %s2692_s14 }
 0x33f   : > { %v507_v21 = vpop.xlane.xlu1 %506 }
 0x340   : > { %v511_v22 = vsub.f32 %v503_v14, %v507_v21 }
 0x342   : > { %v513_v23 = vmul.f32 1.442695, %v511_v22 }
 0x343   : > { %v510_v24 = vpop.xlane.xlu1 %509 }
 0x344   : > { %2460 = vpow2.f32 %v513_v23  ;;  %v512_v25 = vsub.f32 %v504_v18, %v510_v24  ;;  %v679_v18 = vld [vmem:[#allocation7] sm:$0xff] }
 0x346   : > { %v515_v26 = vmul.f32 1.442695, %v512_v25 }
 0x347   : > { %v528_v27 = vpop.permute.xlu1 %527 }
 0x348   : > { %2462 = vpow2.f32 %v515_v26  ;;  %2263 = vmatpush3.msra.mxu1 %v528_v27 }
 0x349   : > { %2267 = vmatprep.subr.mxu1 %v2688_v8 }
 0x34b   : > { %v604_v32 = vpop.permute.xlu1 %603 }
 0x34e   : > { %v2461_v28 = vpop.eup %2460 }
 0x34f   : > { %v517_v29 = vsel %vm351_vm2, %v2461_v28, 0.0  ;;  %v761_v33 = vpop.permute.xlu1 %760 }
 0x350   : > { %518 = vadd.xlane.f32.xlu0 %v517_v29 }
 0x352   : > { %v2463_v30 = vpop.eup %2462 }
 0x353   : > { %v520_v31 = vsel %vm351_vm2, %v2463_v30, 0.0 }
 0x354   : > { %521 = vadd.xlane.f32.xlu1 %v520_v31 }
 0x365   : > { %758 = vrot.lane.b32.xlu1 %v2956_v9, %s2693_s20 }
 0x366   : > { %682 = vrot.lane.b32.xlu0 %v2958_v10, %s2692_s14  ;;  %s2701_s14 = smov [#allocation10]  }
 0x369   : > { %680 = vrot.lane.b32.xlu1 %v2958_v10, %s2693_s20  ;;  %s2610_s20 = sshll.u32 %s2701_s14, 4  ;;  %s2611_s20 = int_to_ptr.vmem [resolvable:$false] %s2610_s20 }
 0x36a   : > { %p2613_p11 = scmp.lt.s32.totalorder %s3089_s12, %s2611_s20 }
 0x3dd   : > { %v519_v34 = vpop.xlane.xlu0 %518 }
 0x3de   : > { %2464 = vrcp.f32 %v519_v34 }
 0x3e1   : > { %v522_v35 = vpop.xlane.xlu1 %521  ;;  %v683_v36 = vpop.permute.xlu0 %682 }
 0x3e2   : > { %2466 = vrcp.f32 %v522_v35  ;;  %2273 = vmatpush3.xpose.msk.msra.mxu0 %vm351_vm2, %v683_v36 }
 0x3e3   : > { %2282 = vmatprep.subr.mxu0 %v2688_v8 }
 0x3e5   : > { %v759_v37 = vpop.permute.xlu1 %758 }
 0x3e8   : > { %v2465_v38 = vpop.eup %2464 }
 0x3e9   : > { %v525_v39 = vmul.f32 %v2465_v38, %v2461_v28  ;;  %v681_v40 = vpop.permute.xlu1 %680 }
 0x3ea   : > { %2275 = vmatmul.mubr.msk.f32.vlgmr.msra.gmra.mrb[2].mxu0 %vm351_vm2, %v681_v40 }
 0x3eb   : > { %2265 = vmatmul.mubr.msk.f32.vlgmr.msra.gmra.mrb[4].mxu1 %vm351_vm2, %v525_v39  ;;  %2284 = vmatprep.mubr.msk.f32.mxu0 %vm2689_vm1, %v2688_v8 }
 0x3ec   : > { %v2467_v41 = vpop.eup %2466  ;;  %2268 = vmatpush3.msra.mxu1 %v604_v32  ;;  %2269 = vmatprep.mubr.msk.f32.mxu1 %vm2689_vm1, %v2688_v8 }
 0x3ed   : > { %v526_v42 = vmul.f32 %v2467_v41, %v2463_v30  ;;  %2277 = vmatprep.subr.mxu1 %v2688_v8 }
 0x3ef   : > { %2270 = vmatmul.mubr.msk.f32.vlgmr.msra.gmra.mrb[6].mxu1 %vm351_vm2, %v526_v42 }
 0x3f0   : > { %2279 = vmatprep.mubr.msk.f32.mxu1 %vm2689_vm1, %v2688_v8 }
 0x3f3   : > { %2278 = vmatpush3.xpose.msk.msra.mxu1 %vm351_vm2, %v761_v33 }
 0x3f4   : > { %2287 = vmatprep.subr.mxu1 %v2688_v8 }
 0x3f6   : > { %2280 = vmatmul.mubr.msk.f32.vlgmr.msra.gmra.mrb[8].mxu1 %vm351_vm2, %v759_v37 }
 0x3f7   : > { %2289 = vmatprep.mubr.msk.f32.mxu1 %vm2689_vm1, %v2688_v8 }
 0x4bd   : > { %v754_v43 = vpop.f32.mrb[2].mxu0 }
 0x4be   : > { %v3002_v44 = vpop.f32.mrb[4].mxu1  ;;  %v2276_v45 = vpop.f32.mrb[3].mxu0  ;;  %v836_v53 = vmul.f32 0.35355338, %v754_v43  ;;  %v1507_v43 = vld [vmem:[#allocation7 + $0x10] sm:$0xff] }
 0x4bf   : > { %v2266_v46 = vpop.f32.mrb[5].mxu1 }
 0x4c0   : > { %v838_v54 = vsel %vm351_vm2, %v836_v53, -inf }
 0x4c2   : > { %v3004_v47 = vpop.f32.mrb[6].mxu1 }
 0x4c3   : > { %v2271_v48 = vpop.f32.mrb[7].mxu1 }
 0x4c9   : > { %v832_v49 = vpop.f32.mrb[8].mxu1 }
 0x4ca   : > { %v837_v50 = vmul.f32 0.35355338, %v832_v49  ;;  %v2281_v51 = vpop.f32.mrb[9].mxu1 }
 0x4cc   : > { %v841_v52 = vsel %vm351_vm2, %v837_v50, -inf }
 0x4cd   : > { %842 = vmax.xlane.f32.xlu1 %v841_v52 }
 0x4de   : > { %936 = vrot.lane.b32.xlu1 %v2956_v9, %s2694_s7 }
 0x4e2   : > { %1175 = vrot.lane.b32.xlu1 %v2958_v10, %s2695_s9 }
 0x4e6   : > { %1255 = vrot.lane.b32.xlu1 %v2956_v9, %s2696_s11 }
 0x4ea   : > { %1253 = vrot.lane.b32.xlu1 %v2956_v9, %s2695_s9 }
 0x50e   : > { %839 = vmax.xlane.f32.xlu1 %v838_v54 }
 0x55a   : > { %v843_v55 = vpop.xlane.xlu1 %842 }
 0x55b   : > { %v845_v56 = vsub.f32 %v837_v50, %v843_v55 }
 0x55d   : > { %v848_v57 = vmul.f32 1.442695, %v845_v56 }
 0x55e   : > { %v937_v58 = vpop.permute.xlu1 %936 }
 0x55f   : > { %2468 = vpow2.f32 %v848_v57  ;;  %2288 = vmatpush3.msra.mxu1 %v937_v58 }
 0x560   : > { %2302 = vmatprep.subr.mxu1 %v2688_v8 }
 0x562   : > { %v1176_v61 = vpop.permute.xlu1 %1175 }
 0x566   : > { %v1256_v62 = vpop.permute.xlu1 %1255 }
 0x569   : > { %v2469_v59 = vpop.eup %2468 }
 0x56a   : > { %v853_v60 = vsel %vm351_vm2, %v2469_v59, 0.0  ;;  %v1254_v63 = vpop.permute.xlu1 %1253 }
 0x56b   : > { %854 = vadd.xlane.f32.xlu0 %v853_v60 }
 0x581   : > { %1177 = vrot.lane.b32.xlu0 %v2958_v10, %s2696_s11 }
 0x59b   : > { %v840_v0 = vpop.xlane.xlu1 %839 }
 0x59c   : > { %v844_v1 = vsub.f32 %v836_v53, %v840_v0 }
 0x59e   : > { %v846_v2 = vmul.f32 1.442695, %v844_v1 }
 0x5a0   : > { %2470 = vpow2.f32 %v846_v2 }
 0x5aa   : > { %v2471_v3 = vpop.eup %2470 }
 0x5ab   : > { %v850_v4 = vsel %vm351_vm2, %v2471_v3, 0.0 }
 0x5ac   : > { %851 = vadd.xlane.f32.xlu0 %v850_v4 }
 0x5c2   : > { %860 = vrot.lane.b32.xlu0 %v2958_v10, %s2694_s7  ;;  %s2612_s7 = scalar_lea.vmem %s2611_s20, 512 }
 0x5c3   : > { %p2614_p1 = scmp.lt.s32.totalorder %s2612_s7, %s2606_s19 }
 0x5c5   : > { %p2615_p2 = por %p2614_p1, %p2613_p11 }
 0x5c6   : > { %1431 = vrot.lane.b32.xlu0 %v2956_v9, %s2697_s30 }
 0x5c7   : > { %p2616_p4 = pnand %p2615_p2, %p2609_p7 }
 0x5ca   : > { %1593 = vrot.lane.b32.xlu0 %v2958_v10, %s2698_s5 }
 0x5ce   : > { %1671 = vrot.lane.b32.xlu0 %v2956_v9, %s2698_s5 }
 0x5d2   : > { %1591 = vrot.lane.b32.xlu0 %v2958_v10, %s2699_s27 }
 0x5f8   : > { %v855_v5 = vpop.xlane.xlu0 %854 }
 0x5f9   : > { %2472 = vrcp.f32 %v855_v5 }
 0x5fc   : > { %v1178_v11 = vpop.permute.xlu0 %1177 }
 0x603   : > { %v2473_v6 = vpop.eup %2472 }
 0x604   : > { %v859_v7 = vmul.f32 %v2473_v6, %v2469_v59 }
 0x606   : > { %2290 = vmatmul.mubr.msk.f32.vlgmr.msra.gmra.mrb[10].mxu1 %vm351_vm2, %v859_v7 }
 0x607   : > { %2303 = vmatpush3.xpose.msk.msra.mxu1 %vm351_vm2, %v1178_v11  ;;  %2304 = vmatprep.mubr.msk.f32.mxu1 %vm2689_vm1, %v2688_v8 }
 0x608   : > { %2307 = vmatprep.subr.mxu1 %v2688_v8 }
 0x60a   : > { %2305 = vmatmul.mubr.msk.f32.vlgmr.msra.gmra.mrb[12].mxu1 %vm351_vm2, %v1176_v61 }
 0x60b   : > { %2308 = vmatpush3.xpose.msk.msra.mxu1 %vm351_vm2, %v1256_v62  ;;  %2309 = vmatprep.mubr.msk.f32.mxu1 %vm2689_vm1, %v2688_v8 }
 0x60c   : > { %2317 = vmatprep.subr.mxu1 %v2688_v8 }
 0x60e   : > { %2310 = vmatmul.mubr.msk.f32.vlgmr.msra.gmra.mrb[14].mxu1 %vm351_vm2, %v1254_v63 }
 0x60f   : > { %2319 = vmatprep.mubr.msk.f32.mxu1 %vm2689_vm1, %v2688_v8 }
 0x639   : > { %v852_v12 = vpop.xlane.xlu0 %851 }
 0x63a   : > { %2474 = vrcp.f32 %v852_v12 }
 0x63d   : > { %v861_v13 = vpop.permute.xlu0 %860 }
 0x63e   : > { %2283 = vmatpush3.msra.mxu0 %v861_v13 }
 0x63f   : > { %2292 = vmatprep.subr.mxu0 %v1012_v17 }
 0x641   : > { %v1432_v14 = vpop.permute.xlu0 %1431 }
 0x642   : > { %2318 = vmatpush3.msra.mxu1 %v1432_v14 }
 0x643   : > { %2327 = vmatprep.subr.mxu1 %v2688_v8 }
 0x644   : > { %v2475_v15 = vpop.eup %2474 }
 0x645   : > { %v858_v16 = vmul.f32 %v2475_v15, %v2471_v3  ;;  %v1594_v45 = vpop.permute.xlu0 %1593 }
 0x647   : > { %2285 = vmatmul.mubr.msk.f32.vlgmr.msra.gmra.mrb[4].mxu0 %vm351_vm2, %v858_v16 }
 0x648   : > { %2293 = vmatpush3.msra.mxu0 %v1012_v17 }
 0x649   : > { %2297 = vmatprep.subr.mxu0 %v679_v18  ;;  %v1672_v49 = vpop.permute.xlu0 %1671 }
 0x64d   : > { %v1592_v51 = vpop.permute.xlu0 %1591 }
 0x6d9   : > { %v1008_v19 = vpop.f32.mrb[10].mxu1 }
 0x6da   : > { %v2291_v20 = vpop.f32.mrb[11].mxu1 }
 0x6dd   : > { %v1249_v21 = vpop.f32.mrb[12].mxu1 }
 0x6de   : > { %v1331_v22 = vmul.f32 0.35355338, %v1249_v21  ;;  %v2306_v23 = vpop.f32.mrb[13].mxu1 }
 0x6e0   : > { %v1333_v24 = vsel %vm351_vm2, %v1331_v22, -inf }
 0x6e1   : > { %1334 = vmax.xlane.f32.xlu1 %v1333_v24  ;;  %v1327_v25 = vpop.f32.mrb[14].mxu1  ;;  %v2183_v24 = vld [vmem:[#allocation8] ss:$0 sm:$0xff] }
 0x6e2   : > { %v1332_v26 = vmul.f32 0.35355338, %v1327_v25  ;;  %v2311_v27 = vpop.f32.mrb[15].mxu1 }
 0x6e4   : > { %v1336_v28 = vsel %vm351_vm2, %v1332_v26, -inf }
 0x6e5   : > { %1337 = vmax.xlane.f32.xlu1 %v1336_v28 }
 0x71a   : > { %v932_v29 = vpop.f32.mrb[4].mxu0 }
 0x71b   : > { %v2286_v30 = vpop.f32.mrb[5].mxu0  ;;  %2294 = vmatprep.mubr.msk.f32.mxu0 %vm351_vm2, %v932_v29 }
 0x71c   : > { %2295 = vmatmul.mubr.msk.f32.vlgmr.msra.gmra.mrb[6].mxu0 %vm351_vm2, %v1008_v19 }
 0x71d   : > { %2299 = vmatprep.mubr.msk.f32.mxu0 %vm351_vm2, %v3002_v44  ;;  %2298 = vmatpush3.msra.mxu0 %v679_v18 }
 0x71e   : > { %2312 = vmatprep.subr.mxu0 %v2688_v8 }
 0x724   : > { %2300 = vmatmul.mubr.msk.f32.vlgmr.msra.gmra.mrb[6].mxu0 %vm351_vm2, %v3004_v47 }
 0x725   : > { %2314 = vmatprep.mubr.msk.f32.mxu0 %vm2689_vm1, %v2688_v8 }
 0x76e   : > { %v1335_v31 = vpop.xlane.xlu1 %1334 }
 0x76f   : > { %v1339_v32 = vsub.f32 %v1331_v22, %v1335_v31 }
 0x771   : > { %v1341_v33 = vmul.f32 1.442695, %v1339_v32 }
 0x772   : > { %v1338_v34 = vpop.xlane.xlu1 %1337 }
 0x773   : > { %2476 = vpow2.f32 %v1341_v33  ;;  %v1340_v35 = vsub.f32 %v1332_v26, %v1338_v34 }
 0x775   : > { %v1343_v36 = vmul.f32 1.442695, %v1340_v35 }
 0x777   : > { %2478 = vpow2.f32 %v1343_v36 }
 0x77d   : > { %v2477_v37 = vpop.eup %2476 }
 0x77e   : > { %v1345_v38 = vsel %vm351_vm2, %v2477_v37, 0.0 }
 0x77f   : > { %1346 = vadd.xlane.f32.xlu1 %v1345_v38 }
 0x781   : > { %v2479_v39 = vpop.eup %2478 }
 0x782   : > { %v1348_v40 = vsel %vm351_vm2, %v2479_v39, 0.0 }
 0x783   : > { %1349 = vadd.xlane.f32.xlu1 %v1348_v40 }
 0x794   : > { %1355 = vrot.lane.b32.xlu1 %v2958_v10, %s2697_s30 }
 0x798   : > { %1669 = vrot.lane.b32.xlu1 %v2956_v9, %s2699_s27 }
 0x80c   : > { %v1347_v41 = vpop.xlane.xlu1 %1346 }
 0x80d   : > { %2480 = vrcp.f32 %v1347_v41 }
 0x810   : > { %v1350_v42 = vpop.xlane.xlu1 %1349 }
 0x811   : > { %2482 = vrcp.f32 %v1350_v42 }
 0x814   : > { %v1356_v44 = vpop.permute.xlu1 %1355 }
 0x815   : > { %2313 = vmatpush3.msra.mxu0 %v1356_v44 }
 0x816   : > { %2322 = vmatprep.subr.mxu0 %v1507_v43 }
 0x817   : > { %v2481_v46 = vpop.eup %2480 }
 0x818   : > { %v1353_v47 = vmul.f32 %v2481_v46, %v2477_v37  ;;  %v1670_v56 = vpop.permute.xlu1 %1669 }
 0x81a   : > { %2315 = vmatmul.mubr.msk.f32.vlgmr.msra.gmra.mrb[8].mxu0 %vm351_vm2, %v1353_v47 }
 0x81b   : > { %v2483_v48 = vpop.eup %2482  ;;  %2323 = vmatpush3.msra.mxu0 %v1507_v43 }
 0x81c   : > { %v1354_v50 = vmul.f32 %v2483_v48, %v2479_v39  ;;  %2332 = vmatprep.subr.mxu0 %v2688_v8 }
 0x81e   : > { %2320 = vmatmul.mubr.msk.f32.vlgmr.msra.gmra.mrb[16].mxu1 %vm351_vm2, %v1354_v50 }
 0x81f   : > { %2328 = vmatpush3.xpose.msk.msra.mxu1 %vm351_vm2, %v1594_v45  ;;  %2329 = vmatprep.mubr.msk.f32.mxu1 %vm2689_vm1, %v2688_v8 }
 0x820   : > { %2337 = vmatprep.subr.mxu1 %v2688_v8 }
 0x822   : > { %2330 = vmatmul.mubr.msk.f32.vlgmr.msra.gmra.mrb[18].mxu1 %vm351_vm2, %v1592_v51 }
 0x823   : > { %2339 = vmatprep.mubr.msk.f32.mxu1 %vm2689_vm1, %v2688_v8 }
 0x8ed   : > { %v1427_v52 = vpop.f32.mrb[8].mxu0 }
 0x8ee   : > { %v2316_v53 = vpop.f32.mrb[9].mxu0  ;;  %2324 = vmatprep.mubr.msk.f32.mxu0 %vm351_vm2, %v1427_v52 }
 0x8f1   : > { %v1503_v54 = vpop.f32.mrb[16].mxu1 }
 0x8f2   : > { %v2321_v55 = vpop.f32.mrb[17].mxu1  ;;  %2325 = vmatmul.mubr.msk.f32.vlgmr.msra.gmra.mrb[6].mxu0 %vm351_vm2, %v1503_v54 }
 0x8f3   : > { %2333 = vmatpush3.xpose.msk.msra.mxu0 %vm351_vm2, %v1672_v49  ;;  %2334 = vmatprep.mubr.msk.f32.mxu0 %vm2689_vm1, %v2688_v8 }
 0x8f4   : > { %2342 = vmatprep.subr.mxu0 %v2688_v8 }
 0x8f5   : > { %v1665_v57 = vpop.f32.mrb[18].mxu1 }
 0x8f6   : > { %v1747_v58 = vmul.f32 0.35355338, %v1665_v57  ;;  %v2331_v59 = vpop.f32.mrb[19].mxu1  ;;  %2335 = vmatmul.mubr.msk.f32.vlgmr.msra.gmra.mrb[10].mxu0 %vm351_vm2, %v1670_v56 }
 0x8f7   : > { %2344 = vmatprep.mubr.msk.f32.mxu0 %vm2689_vm1, %v2688_v8 }
 0x8f8   : > { %v1749_v60 = vsel %vm351_vm2, %v1747_v58, -inf }
 0x8f9   : > { %1750 = vmax.xlane.f32.xlu0 %v1749_v60 }
 0x986   : > { %v1751_v61 = vpop.xlane.xlu0 %1750 }
 0x987   : > { %v1755_v62 = vsub.f32 %v1747_v58, %v1751_v61 }
 0x989   : > { %v1757_v63 = vmul.f32 1.442695, %v1755_v62 }
 0x98b   : > { %2484 = vpow2.f32 %v1757_v63 }
 0x995   : > { %v2485_v0 = vpop.eup %2484 }
 0x996   : > { %v1761_v1 = vsel %vm351_vm2, %v2485_v0, 0.0 }
 0x997   : > { %1762 = vadd.xlane.f32.xlu0 %v1761_v1 }
 0x9c9   : > { %v1743_v2 = vpop.f32.mrb[10].mxu0 }
 0x9ca   : > { %v1748_v3 = vmul.f32 0.35355338, %v1743_v2  ;;  %v2336_v4 = vpop.f32.mrb[11].mxu0 }
 0x9cc   : > { %v1752_v5 = vsel %vm351_vm2, %v1748_v3, -inf }
 0x9cd   : > { %1753 = vmax.xlane.f32.xlu1 %v1752_v5 }
 0x9de   : > { %1771 = vrot.lane.b32.xlu1 %v2958_v10, %s2700_s6  ;;  %v1923_v10 = vld [vmem:[#allocation7 + $0x18] sm:$0xff] }
 0xa24   : > { %v1763_v8 = vpop.xlane.xlu0 %1762 }
 0xa25   : > { %2486 = vrcp.f32 %v1763_v8 }
 0xa2f   : > { %v2487_v7 = vpop.eup %2486 }
 0xa30   : > { %v1769_v13 = vmul.f32 %v2487_v7, %v2485_v0 }
 0xa5a   : > { %v1754_v6 = vpop.xlane.xlu1 %1753 }
 0xa5b   : > { %v1756_v11 = vsub.f32 %v1748_v3, %v1754_v6 }
 0xa5d   : > { %v1759_v12 = vmul.f32 1.442695, %v1756_v11 }
 0xa5e   : > { %v1772_v14 = vpop.permute.xlu1 %1771 }
 0xa5f   : > { %2488 = vpow2.f32 %v1759_v12  ;;  %2338 = vmatpush3.msra.mxu1 %v1772_v14 }
 0xa60   : > { %2340 = vmatmul.mubr.msk.f32.vlgmr.msra.gmra.mrb[20].mxu1 %vm351_vm2, %v1769_v13 }
 0xa69   : > { %v2489_v15 = vpop.eup %2488 }
 0xa6a   : > { %v1764_v16 = vsel %vm351_vm2, %v2489_v15, 0.0 }
 0xa6b   : > { %1765 = vadd.xlane.f32.xlu0 %v1764_v16 }
 0xa81   : > { %1847 = vrot.lane.b32.xlu0 %v2956_v9, %s2700_s6 }
 0xaf8   : > { %v1766_v17 = vpop.xlane.xlu0 %1765 }
 0xaf9   : > { %2490 = vrcp.f32 %v1766_v17 }
 0xafc   : > { %v1848_v18 = vpop.permute.xlu0 %1847 }
 0xafd   : > { %2343 = vmatpush3.msra.mxu0 %v1848_v18 }
 0xafe   : > { %2347 = vmatprep.subr.mxu0 %v1923_v10 }
 0xb03   : > { %v2491_v19 = vpop.eup %2490 }
 0xb04   : > { %v1770_v20 = vmul.f32 %v2491_v19, %v2489_v15 }
 0xb06   : > { %2345 = vmatmul.mubr.msk.f32.vlgmr.msra.gmra.mrb[12].mxu0 %vm351_vm2, %v1770_v20 }
 0xb07   : > { %2348 = vmatpush3.msra.mxu0 %v1923_v10 }
 0xb33   : > { %v1843_v21 = vpop.f32.mrb[20].mxu1 }
 0xb34   : > { %v2341_v22 = vpop.f32.mrb[21].mxu1  ;;  %2349 = vmatprep.mubr.msk.f32.mxu0 %vm351_vm2, %v1843_v21 }
 0xbd9   : > { %v1919_v23 = vpop.f32.mrb[12].mxu0 }
 0xbda   : > { %v2346_v9 = vpop.f32.mrb[13].mxu0  ;;  %2350 = vmatmul.mubr.msk.f32.vlgmr.msra.gmra.mrb[6].mxu0 %vm351_vm2, %v1919_v23 }
 0xcad   : > { %v2351_v25 = vpop.f32.mrb[6].mxu0 }
 0xcae   : > { %v2015_v26 = vadd.f32 %v2351_v25, %v2183_v24  ;;  %v1996_v27 = vpop.f32.mrb[7].mxu0 }
 0xcaf   : > { %v2014_v28 = vadd.f32 %v2183_v24, %v1996_v27 }
 0xcb0   : > { %2017 = vst.msk [vmem:[%s257_s8 + $0x8] sm:$0xff] %vm266_vm0, %v2015_v26 }
 0xcb1   : > { %2016 = vst.msk [vmem:[%s257_s8] sm:$0xff] %vm266_vm0, %v2014_v28 }
 0xcb2   : > { %2619 = shalt.err (!%p2616_p4)
}
 0xcb3   : > { %s2620_s9 = scalar_lea.hbm %s3094_s23, 256  ;;  %s2624_s5 = scalar_lea.hbm %s3143_s4, 1024 }
 0xcb4   : > { %p2621_p9 = scmp.ne.s32.totalorder %s3094_s23, %s2620_s9  ;;  %p2625_p8 = scmp.lt.u32.totalorder %s3094_s23, %s3143_s4 }
 0xcb5   : > { %p2626_p12 = scmp.lt.u32.totalorder %s2624_s5, %s2620_s9  ;;  %p2628_p0 = scmp.lt.u32.totalorder %s2620_s9, %s3094_s23 }
 0xcb6   : > { %p2622_p13 = pnand %p2621_p9, %p2879_p5 }
 0xcb7   : > { %p2627_p6 = por %p2626_p12, %p2625_p8 }
 0xcb8   : > { %p2623_p10 = pneg %p2622_p13 }
 0xcb9   : > { %p2629_p3 = por %p2628_p0, %p2627_p6 }
 0xcbb   : > { %p2630_p7 = pnand %p2629_p3, %p2623_p10 }
 0xcbd   : > { %2633 = shalt.err (!%p2630_p7)
}
 0xcbe   : > { %s2702_s8 = smov 128   ;;  %s2703_s29 = smov 8  }
 0xcbf   : > { %2380 = dma.vmem_to_hbm [thread:$0]  (%p2879_p5), %s3089_s12, 256, %s3094_s23, %s2019_s26, %s2702_s8, %s2702_s8, %s2703_s29  }
 0xcc0 PF: > { %p2407_p11 = scmp.ge.s32.totalorder %s2680_s18, 2  ;;  %s2047_s28 = sand.u32 1, %s2668_s15  }
 0xcc1   : > { %p3161_p1 = scmp.ne.s32.totalorder %s3148_s22, 0  ;;  %s2048_s21 = scalar_lea.sflag [#allocation4], %s2047_s28 }
 0xcc3   : > { %p2397_p2 = pnand %p2407_p11, %p3161_p1 }
 0xcc5   : > { %2663 = dma.done.wait (!%p2397_p2), %s2048_s21, 256  }
 0xcc6   : > { %2665 = vsyncadd (!%p2397_p2), %s2048_s21, 4294967040  ;;  %p19_p4 = scmp.ge.s32.totalorder %s2865_s10, 6   ;;  %s3162_s15 = smov %s2672_s16 }
 0xcc7   : > { %s3163_s16 = smov %s2676_s17  ;;  %s3164_s17 = smov %s2875_s13 }
 0xcc8   : > { %s3165_s18 = smov %s2865_s10  ;;  %21 = sbr.rel (!%p19_p4) target bundleno = 7 (0x7), region = 93 }
 0xccf   :  { %2053 = vsyncpa [#allocation3], 1 }
 0xcd0   :  { %2055 = vsyncpa [#allocation3 + $0x1], 1 }
 0xcd1   :  { %2056 = vsyncpa [#allocation6], 1 }
 0xcd2   :  { %2057 = vsyncpa [#allocation9], 1 }
 0xcd3   :  { %2058 = vsyncpa [#allocation4], 1 }
 0xcd4   :  { %2060 = vsyncpa [#allocation4 + $0x1], 1 }

</bundles_post_ra>
